<compile_context>
chip_gen: v6e
topology: v6e:2x2x1
jax: 0.10.0
libtpu: 0.0.40
codegen_flags: <defaults>
</compile_context>

<pallas_src>
import functools

import jax
import jax.numpy as jnp
from jax import lax
from jax.experimental import pallas as pl
from jax.experimental.pallas import tpu as pltpu

# Plain Python floats only -- jnp scalars here would be captured as kernel
# constants and break tracing ("captures constants [f32[]]").
_NEG_LARGE = -1.0e30

# Below this table size, double-buffering the resident table is negligible;
# above it we request single-buffering (v7x VMEM headroom).
_TABLE_SINGLE_BUFFER_BYTES = 2 * 1024 * 1024


def _round_up(x, m):
    return ((x + m - 1) // m) * m


def _resident_table_spec(vp):
    """BlockSpec for the VMEM-resident (Vp, Vp) table (constant index_map).

    For big tables, request single-buffering (pipeline_mode=pl.Buffered(1));
    fall back silently on jax versions without that API.
    """
    table_bytes = vp * vp * 4
    buffered = getattr(pl, "Buffered", None)
    if buffered is not None and table_bytes >= _TABLE_SINGLE_BUFFER_BYTES:
        try:
            return pl.BlockSpec((vp, vp), lambda i: (0, 0),
                                pipeline_mode=buffered(1))
        except TypeError:
            pass
    return pl.BlockSpec((vp, vp), lambda i: (0, 0))


def _compiler_params(vp, tn, out_lane_bytes):
    """dimension_semantics + an explicit VMEM limit when the table is large."""
    table_bytes = vp * vp * 4
    # Conservative: 2x table (in case single-buffering was unavailable),
    # double-buffered wide output tile, plus temp headroom.
    need = 2 * table_bytes + 2 * tn * out_lane_bytes + 4 * tn * vp * 4 + (4 << 20)
    vmem_limit = None
    if need > (32 << 20):
        # NOTE: on v7x (64 MiB/TC) very large V should use the row-gather
        # TODO path instead of a resident table.
        vmem_limit = int(min(need, 100 << 20))
    return pltpu.CompilerParams(dimension_semantics=("parallel",),
                                vmem_limit_bytes=vmem_limit)


# --------------------------------------------------------------------------
# Kernels
# --------------------------------------------------------------------------

def _bigram_train_kernel(tok_ref, table_ref, logits_ref, loss_ref, *, valid_v):
    # tok_ref:    (tn, 2)  int32   [:, 0] = token ids, [:, 1] = targets
    # table_ref:  (Vp, Vp) float32 zero-padded embedding table (VMEM-resident)
    # logits_ref: (tn, Vp) f32/bf16 lane-dense logits output
    # loss_ref:   (tn, 1)  float32 per-row cross-entropy (mean taken outside)
    tn = tok_ref.shape[0]
    vp = table_ref.shape[1]
    lane = lax.broadcasted_iota(jnp.int32, (tn, vp), 1)

    tok = tok_ref[...]
    ids = tok[:, 0:1]                                             # (tn, 1)
    tgt = tok[:, 1:2]                                             # (tn, 1)

    # Embedding lookup as a one-hot matmul on the MXU (K/N aligned to 128).
    onehot = (ids == lane).astype(jnp.float32)                    # (tn, Vp)
    logits = jnp.dot(onehot, table_ref[...],
                     preferred_element_type=jnp.float32)          # (tn, Vp)
    logits_ref[...] = logits.astype(logits_ref.dtype)

    # Cross entropy over valid vocab lanes only; CE math stays f32.
    masked = jnp.where(lane < valid_v, logits, _NEG_LARGE)
    m = jnp.max(masked, axis=-1, keepdims=True)                   # (tn, 1)
    lse = m + jnp.log(jnp.sum(jnp.exp(masked - m), axis=-1, keepdims=True))
    picked = jnp.sum(jnp.where(tgt == lane, logits, 0.0),
                     axis=-1, keepdims=True)                      # (tn, 1)
    loss_ref[...] = lse - picked


def _bigram_loss_kernel(tok_ref, table_ref, loss_ref, *, valid_v):
    # Loss-only variant: no (tn, Vp) logits writeback -> near-zero HBM stores.
    tn = tok_ref.shape[0]
    vp = table_ref.shape[1]
    lane = lax.broadcasted_iota(jnp.int32, (tn, vp), 1)

    tok = tok_ref[...]
    ids = tok[:, 0:1]
    tgt = tok[:, 1:2]

    onehot = (ids == lane).astype(jnp.float32)
    logits = jnp.dot(onehot, table_ref[...],
                     preferred_element_type=jnp.float32)

    masked = jnp.where(lane < valid_v, logits, _NEG_LARGE)
    m = jnp.max(masked, axis=-1, keepdims=True)
    lse = m + jnp.log(jnp.sum(jnp.exp(masked - m), axis=-1, keepdims=True))
    picked = jnp.sum(jnp.where(tgt == lane, logits, 0.0),
                     axis=-1, keepdims=True)
    loss_ref[...] = lse - picked


def _bigram_logits_kernel(idx_ref, table_ref, logits_ref):
    # Inference / generate() path: embedding gather only, no CE / EUP work.
    tn = idx_ref.shape[0]
    vp = table_ref.shape[1]
    lane = lax.broadcasted_iota(jnp.int32, (tn, vp), 1)
    onehot = (idx_ref[...] == lane).astype(jnp.float32)
    logits = jnp.dot(onehot, table_ref[...],
                     preferred_element_type=jnp.float32)
    logits_ref[...] = logits.astype(logits_ref.dtype)


# --------------------------------------------------------------------------
# Wrapper
# --------------------------------------------------------------------------

def bigram_forward(idx, table, targets=None, *, row_tile=1024,
                   logits_dtype=jnp.float32, return_logits=True,
                   keep_vocab_padding=False):
    """Forward pass of BigramLanguageModel.

    idx:     (B, T) int token ids
    table:   (V, V) float32 embedding table
    targets: (B, T) int or None

    Returns (logits, loss):
      targets is None     -> logits (B, T, V), loss None          (PyTorch eval path)
      targets given       -> logits (B*T, V), loss scalar          (PyTorch train path)
      return_logits=False -> logits None, loss scalar              (saves the big HBM write)
    With keep_vocab_padding=True the lane-dense padded vocab (Vp) is returned
    instead of V (avoids the un-lane-aligned wrapper slice/copy).
    logits_dtype=jnp.bfloat16 halves HBM logits write traffic (CE stays f32).
    """
    B, T = idx.shape
    V = table.shape[0]
    N = B * T

    # Lane-dense padding of the vocab dim.
    Vp = _round_up(V, 128)

    # Row tiling: derive tile from cdiv to bound padded-row waste; force >= 2
    # grid steps for large N so both v7x TensorCores get work.
    n_tiles = pl.cdiv(N, row_tile)
    if n_tiles == 1 and N >= 512:
        n_tiles = 2
    tn = _round_up(pl.cdiv(N, n_tiles), 8)
    Np = _round_up(N, tn)
    grid = (Np // tn,)

    # Zero-padded table: extra rows never selected (idx < V); extra columns
    # masked out of the softmax / ignored downstream.
    table_p = jnp.zeros((Vp, Vp), jnp.float32).at[:V, :V].set(
        table.astype(jnp.float32))
    table_spec = _resident_table_spec(Vp)
    out_itemsize = jnp.dtype(logits_dtype).itemsize

    if targets is None:
        # ------------------------------------------------------------------
        # Logits-only kernel (generate() path): no target DMA, no logsumexp.
        # ------------------------------------------------------------------
        idx_flat = jnp.zeros((Np, 1), jnp.int32).at[:N, 0].set(
            idx.reshape(N).astype(jnp.int32))
        logits_p = pl.pallas_call(
            _bigram_logits_kernel,
            out_shape=jax.ShapeDtypeStruct((Np, Vp), logits_dtype),
            grid_spec=pltpu.PrefetchScalarGridSpec(
                num_scalar_prefetch=0,
                grid=grid,
                in_specs=[
                    pl.BlockSpec((tn, 1), lambda i: (i, 0)),
                    table_spec,                              # VMEM-resident
                ],
                out_specs=pl.BlockSpec((tn, Vp), lambda i: (i, 0)),
            ),
            compiler_params=_compiler_params(Vp, tn, Vp * out_itemsize),
            cost_estimate=pl.CostEstimate(
                flops=2 * Np * Vp * Vp,
                transcendentals=0,
                bytes_accessed=4 * Vp * Vp + 4 * Np + Np * Vp * out_itemsize),
        )(idx_flat, table_p)
        if keep_vocab_padding:
            logits = logits_p[:N].reshape(B, T, Vp)
        else:
            logits = logits_p[:N, :V].reshape(B, T, V)
        return logits, None

    # ----------------------------------------------------------------------
    # Training path: merge idx + targets into one (Np, 2) block (fewer DMAs).
    # ----------------------------------------------------------------------
    tok_flat = jnp.zeros((Np, 2), jnp.int32)
    tok_flat = tok_flat.at[:N, 0].set(idx.reshape(N).astype(jnp.int32))
    tok_flat = tok_flat.at[:N, 1].set(targets.reshape(N).astype(jnp.int32))

    if not return_logits:
        # Loss-only kernel: drops the entire (Np, Vp) logits writeback.
        kernel = functools.partial(_bigram_loss_kernel, valid_v=V)
        loss_rows = pl.pallas_call(
            kernel,
            out_shape=jax.ShapeDtypeStruct((Np, 1), jnp.float32),
            grid_spec=pltpu.PrefetchScalarGridSpec(
                num_scalar_prefetch=0,
                grid=grid,
                in_specs=[
                    pl.BlockSpec((tn, 2), lambda i: (i, 0)),
                    table_spec,                              # VMEM-resident
                ],
                out_specs=pl.BlockSpec((tn, 1), lambda i: (i, 0)),
            ),
            compiler_params=_compiler_params(Vp, tn, 4),
            cost_estimate=pl.CostEstimate(
                flops=2 * Np * Vp * Vp + 8 * Np * Vp,
                transcendentals=Np * Vp,
                bytes_accessed=4 * Vp * Vp + 8 * Np + 4 * Np),
        )(tok_flat, table_p)
        loss = jnp.mean(loss_rows[:N, 0])   # mean over true rows only
        return None, loss

    kernel = functools.partial(_bigram_train_kernel, valid_v=V)
    logits_p, loss_rows = pl.pallas_call(
        kernel,
        out_shape=(
            jax.ShapeDtypeStruct((Np, Vp), logits_dtype),
            jax.ShapeDtypeStruct((Np, 1), jnp.float32),
        ),
        grid_spec=pltpu.PrefetchScalarGridSpec(
            num_scalar_prefetch=0,
            grid=grid,
            in_specs=[
                pl.BlockSpec((tn, 2), lambda i: (i, 0)),
                table_spec,                                  # VMEM-resident
            ],
            out_specs=[
                pl.BlockSpec((tn, Vp), lambda i: (i, 0)),
                pl.BlockSpec((tn, 1), lambda i: (i, 0)),
            ],
        ),
        compiler_params=_compiler_params(Vp, tn, Vp * out_itemsize),
        cost_estimate=pl.CostEstimate(
            flops=2 * Np * Vp * Vp + 8 * Np * Vp,
            transcendentals=Np * Vp,
            bytes_accessed=(4 * Vp * Vp + 8 * Np
                            + Np * Vp * out_itemsize + 4 * Np)),
    )(tok_flat, table_p)

    loss = jnp.mean(loss_rows[:N, 0])       # mean over true rows only
    if keep_vocab_padding:
        logits = logits_p[:N]               # (B*T, Vp) lane-dense slab
    else:
        logits = logits_p[:N, :V]           # (B*T, V), matches PyTorch view
    return logits, loss


if __name__ == "__main__":
    vocab_size = 65   # e.g. tiny-shakespeare character vocab
    B, T = 2, 8

    key = jax.random.PRNGKey(0)
    k_table, k_idx, k_tgt = jax.random.split(key, 3)

    # nn.Embedding default init: N(0, 1)
    table = jax.random.normal(k_table, (vocab_size, vocab_size), dtype=jnp.float32)
    idx = jax.random.randint(k_idx, (B, T), 0, vocab_size, dtype=jnp.int32)
    targets = jax.random.randint(k_tgt, (B, T), 0, vocab_size, dtype=jnp.int32)

    logits, loss = bigram_forward(idx, table, targets)                  # train path
    _, loss_only = bigram_forward(idx, table, targets,                  # loss-only
                                  return_logits=False)
    logits_inf, loss_inf = bigram_forward(idx, table)                   # inference path
    jax.block_until_ready((logits, loss, loss_only, logits_inf))

    # Reference in plain JAX (embedding gather + cross entropy).
    ref_logits = table[idx]                                             # (B, T, V)
    lf = ref_logits.reshape(B * T, vocab_size)
    tf = targets.reshape(B * T)
    ref_loss = jnp.mean(
        jax.nn.logsumexp(lf, axis=-1) - lf[jnp.arange(B * T), tf])

    assert logits.shape == (B * T, vocab_size)          # PyTorch train branch shape
    assert jnp.allclose(logits, lf, atol=1e-5, rtol=1e-5)
    assert logits_inf.shape == (B, T, vocab_size)
    assert jnp.allclose(logits_inf, ref_logits, atol=1e-5, rtol=1e-5)
    assert loss_inf is None
    assert jnp.allclose(loss, ref_loss, atol=1e-4, rtol=1e-5)
    assert jnp.allclose(loss_only, ref_loss, atol=1e-4, rtol=1e-5)

    # TODO(synk): generate() (autoregressive multinomial sampling loop) is
    # host-side control flow and is not implemented as a kernel; the
    # targets=None path above provides the per-step logits it needs.
    print("KERNEL_OK")
</pallas_src>

<mosaic_0001>
module attributes {stable_mosaic.version = 11 : i64} {
  func.func @_bigram_train_kernel(%arg0: i32, %arg1: memref<16x2xi32, #tpu.memory_space<vmem>>, %arg2: memref<128x128xf32, #tpu.memory_space<vmem>>, %arg3: memref<16x128xf32, #tpu.memory_space<vmem>>, %arg4: memref<16x1xf32, #tpu.memory_space<vmem>>) attributes {dimension_semantics = [#tpu.dimension_semantics<parallel>], iteration_bounds = array<i64: 1>, scalar_prefetch = 0 : i64, scratch_operands = 0 : i64, tpu.core_type = #tpu.core_type<tc>, window_params = [{transform_indices = @transform_0, window_bounds = array<i64: 16, 2>}, {pipeline_mode = #tpu.pipeline_mode<synchronous>, transform_indices = @transform_1, window_bounds = array<i64: 128, 128>}, {transform_indices = @transform_2, window_bounds = array<i64: 16, 128>}, {transform_indices = @transform_3, window_bounds = array<i64: 16, 1>}]} {
    %0 = tpu.iota {dimensions = array<i32: 1>} : vector<16x128xi32>
    %c0 = arith.constant 0 : index
    %c0_0 = arith.constant 0 : index
    %1 = vector.load %arg1[%c0, %c0_0] : memref<16x2xi32, #tpu.memory_space<vmem>>, vector<16x2xi32>
    %2 = vector.extract_strided_slice %1 {offsets = [0, 0], sizes = [16, 1], strides = [1, 1]} : vector<16x2xi32> to vector<16x1xi32>
    %3 = vector.extract_strided_slice %1 {offsets = [0, 1], sizes = [16, 1], strides = [1, 1]} : vector<16x2xi32> to vector<16x1xi32>
    %4 = vector.broadcast %2 : vector<16x1xi32> to vector<16x128xi32>
    %5 = arith.cmpi eq, %4, %0 : vector<16x128xi32>
    %6 = arith.extui %5 : vector<16x128xi1> to vector<16x128xi32>
    %7 = arith.sitofp %6 : vector<16x128xi32> to vector<16x128xf32>
    %c0_1 = arith.constant 0 : index
    %c0_2 = arith.constant 0 : index
    %8 = vector.load %arg2[%c0_1, %c0_2] : memref<128x128xf32, #tpu.memory_space<vmem>>, vector<128x128xf32>
    %cst = arith.constant dense<0.000000e+00> : vector<16x128xf32>
    %9 = tpu.matmul %7, %8, %cst {dimension_numbers = #tpu.dot_dimension_numbers<[1], [0], [0], [1], [0, 0, 1, 1], [], []>} : vector<16x128xf32>, vector<128x128xf32>, vector<16x128xf32> -> vector<16x128xf32>
    %c0_3 = arith.constant 0 : index
    %c0_4 = arith.constant 0 : index
    %10 = vector.load %arg3[%c0_3, %c0_4] : memref<16x128xf32, #tpu.memory_space<vmem>>, vector<16x128xf32>
    tpu.vector_store %arg3[%c0_3, %c0_4], %9 {strides = array<i32>} : memref<16x128xf32, #tpu.memory_space<vmem>>, vector<16x128xf32>,
    %c65_i32 = arith.constant 65 : i32
    %11 = vector.broadcast %c65_i32 : i32 to vector<16x128xi32>
    %12 = arith.cmpi slt, %0, %11 : vector<16x128xi32>
    %cst_5 = arith.constant -1.000000e+30 : f32
    %13 = vector.broadcast %cst_5 : f32 to vector<16x128xf32>
    %14 = arith.select %12, %9, %13 : vector<16x128xi1>, vector<16x128xf32>
    %cst_6 = arith.constant dense<0xFF800000> : vector<16xf32>
    %15 = vector.multi_reduction <maximumf>, %14, %cst_6 [1] : vector<16x128xf32> to vector<16xf32>
    %16 = vector.shape_cast %15 : vector<16xf32> to vector<16x1xf32>
    %17 = vector.broadcast %16 : vector<16x1xf32> to vector<16x128xf32>
    %18 = arith.subf %14, %17 : vector<16x128xf32>
    %19 = math.exp %18 : vector<16x128xf32>
    %cst_7 = arith.constant dense<0.000000e+00> : vector<16xf32>
    %20 = vector.multi_reduction <add>, %19, %cst_7 [1] : vector<16x128xf32> to vector<16xf32>
    %21 = vector.shape_cast %20 : vector<16xf32> to vector<16x1xf32>
    %22 = math.log %21 : vector<16x1xf32>
    %23 = arith.addf %16, %22 : vector<16x1xf32>
    %24 = vector.broadcast %3 : vector<16x1xi32> to vector<16x128xi32>
    %25 = arith.cmpi eq, %24, %0 : vector<16x128xi32>
    %cst_8 = arith.constant 0.000000e+00 : f32
    %26 = vector.broadcast %cst_8 : f32 to vector<16x128xf32>
    %27 = arith.select %25, %9, %26 : vector<16x128xi1>, vector<16x128xf32>
    %cst_9 = arith.constant dense<0.000000e+00> : vector<16xf32>
    %28 = vector.multi_reduction <add>, %27, %cst_9 [1] : vector<16x128xf32> to vector<16xf32>
    %29 = vector.shape_cast %28 : vector<16xf32> to vector<16x1xf32>
    %30 = arith.subf %23, %29 : vector<16x1xf32>
    %c0_10 = arith.constant 0 : index
    %c0_11 = arith.constant 0 : index
    %31 = vector.load %arg4[%c0_10, %c0_11] : memref<16x1xf32, #tpu.memory_space<vmem>>, vector<16x1xf32>
    tpu.vector_store %arg4[%c0_10, %c0_11], %30 {strides = array<i32>} : memref<16x1xf32, #tpu.memory_space<vmem>>, vector<16x1xf32>,
    return
  }
  func.func @transform_0(%arg0: i32) -> (i32, i32) {
    %c0_i32 = arith.constant 0 : i32
    %c0_i32_0 = arith.constant 0 : i32
    return %arg0, %c0_i32 : i32, i32
  }
  func.func @transform_1(%arg0: i32) -> (i32, i32) {
    %c0_i32 = arith.constant 0 : i32
    %c0_i32_0 = arith.constant 0 : i32
    %c0_i32_1 = arith.constant 0 : i32
    return %c0_i32, %c0_i32_0 : i32, i32
  }
  func.func @transform_2(%arg0: i32) -> (i32, i32) {
    %c0_i32 = arith.constant 0 : i32
    %c0_i32_0 = arith.constant 0 : i32
    return %arg0, %c0_i32 : i32, i32
  }
  func.func @transform_3(%arg0: i32) -> (i32, i32) {
    %c0_i32 = arith.constant 0 : i32
    %c0_i32_0 = arith.constant 0 : i32
    return %arg0, %c0_i32 : i32, i32
  }
}

</mosaic_0001>

<bundles_post_ra>
// kernel: tpu_custom_call.1
= control target key start
LH: loop header
LB: loop body
LE: loop exit
PB: predicated region body
PF: predicated region fallthrough
CT: control target
= control target key end

     0   :  { %9 = vsyncpa [#allocation3], 0  ;;  %s374_s0 = inlined_call_operand.vmem [shape: s32[16,2], index: 0, kind: input, shape index: {}]   ;;  %s375_s1 = inlined_call_operand.hbm [shape: f32[128,128], index: 1, kind: input, shape index: {}]   ;;  %s376_s2 = inlined_call_operand.hbm [shape: f32[16,128], index: 2, kind: output, shape index: {0}]   ;;  %s377_s3 = inlined_call_operand.vmem [shape: f32[16,1], index: 3, kind: output, shape index: {1}]  }
   0x1   :  { %10 = vsyncpa [#allocation4], 0  ;;  %s319_s12 = smov [#allocation2]  }
   0x2   :  { %s18_s13 = sshll.u32 %s319_s12, 4  ;;  %s19_s13 = int_to_ptr.vmem [resolvable:$true] %s18_s13 }
   0x3   :  { %s283_s14 = scalar_lea.vmem %s19_s13, 2048  ;;  %p288_p1 = scmp.lt.s32.totalorder %s19_s13, %s19_s13 }
   0x4   :  { %p284_p0 = scmp.ne.s32.totalorder %s19_s13, %s283_s14  ;;  %p289_p2 = scmp.lt.s32.totalorder %s283_s14, %s283_s14 }
   0x6   :  { %p290_p3 = por %p289_p2, %p288_p1 }
   0x8   :  { %p291_p4 = pnand %p290_p3, %p284_p0 }
   0xa   :  { %294 = shalt.err (!%p291_p4)
}
   0xb   :  { %s320_s15 = smov 128   ;;  %s321_s16 = smov 8  }
   0xc   :  { %24 = dma.hbm_to_vmem [thread:$0]  %s375_s1, 2048, %s19_s13, [#allocation3], %s320_s15, %s320_s15, %s321_s16  }
   0xd   :  { %315 = dma.done.wait [#allocation3], 2048  }
   0xe   :  { %316 = vsyncadd [#allocation3], 4294965248  ;;  %v322_v0 = vmov 0   ;;  %v30_v1 = vld [vmem:[%s374_s0] sm:$0xff]  ;;  %v59_v2 = vld [vmem:[#allocation2 + $0x78] sm:$0xff]  ;;  %v323_v6 = vmov 1   ;;  %v28_v20 = vlaneseq }
   0xf   :  { %264 = vset.pattern.permute.xlu0 %v322_v0  ;;  %222 = vmatprep.subr.mxu0 %v59_v2  ;;  %v58_v3 = vld [vmem:[#allocation2 + $0x70] sm:$0xff]  ;;  %v358_v4 = vld [vmem:[%s374_s0 + $0x8] sm:$0xff]  ;;  %v56_v7 = vld [vmem:[#allocation2 + $0x60] sm:$0xff]  ;;  %v324_v23 = vmov 1.0   ;;  %s325_s0 = smov [#allocation5]  }
  0x10   :  { %33 = vperm.xlu0 %264, %v30_v1   ;;  %223 = vmatpush3.msra.mxu0 %v59_v2  ;;  %v57_v5 = vld [vmem:[#allocation2 + $0x68] sm:$0xff]  ;;  %v55_v8 = vld [vmem:[#allocation2 + $0x58] sm:$0xff]  ;;  %v54_v9 = vld [vmem:[#allocation2 + $0x50] sm:$0xff]  ;;  %v29_v21 = vand.u32 127, %v28_v20  ;;  %s184_s1 = sshll.u32 %s325_s0, 4  ;;  %s185_s1 = int_to_ptr.vmem [resolvable:$true] %s184_s1 }
  0x11   :  { %224 = vmatprep.subr.mxu0 %v58_v3  ;;  %266 = vset.pattern.permute.xlu1 %v323_v6  ;;  %v53_v10 = vld [vmem:[#allocation2 + $0x48] sm:$0xff]  ;;  %v52_v11 = vld [vmem:[#allocation2 + $0x40] sm:$0xff]  ;;  %v51_v12 = vld [vmem:[#allocation2 + $0x38] sm:$0xff]  ;;  %s295_s23 = scalar_lea.vmem %s185_s1, 256  ;;  %p300_p6 = scmp.lt.s32.totalorder %s185_s1, %s185_s1 }
  0x12   :  { %225 = vmatpush3.msra.mxu0 %v58_v3  ;;  %v50_v13 = vld [vmem:[#allocation2 + $0x30] sm:$0xff]  ;;  %v49_v14 = vld [vmem:[#allocation2 + $0x28] sm:$0xff]  ;;  %v48_v15 = vld [vmem:[#allocation2 + $0x20] sm:$0xff]  ;;  %vm137_vm2 = vcmp.lt.s32.totalorder %v29_v21, 65  ;;  %p296_p5 = scmp.ne.s32.totalorder %s185_s1, %s295_s23  ;;  %p301_p7 = scmp.lt.s32.totalorder %s295_s23, %s295_s23 }
  0x13   :  { %226 = vmatprep.subr.mxu0 %v57_v5  ;;  %v47_v16 = vld [vmem:[#allocation2 + $0x18] sm:$0xff]  ;;  %v46_v17 = vld [vmem:[#allocation2 + $0x10] sm:$0xff]  ;;  %v45_v18 = vld [vmem:[#allocation2 + $0x8] sm:$0xff] }
  0x14   :  { %36 = vperm.xlu0 %264, %v358_v4   ;;  %227 = vmatpush3.msra.mxu0 %v57_v5  ;;  %v44_v19 = vld [vmem:[#allocation2] sm:$0xff]  ;;  %p302_p8 = por %p301_p7, %p300_p6 }
  0x15   :  { %228 = vmatprep.subr.mxu0 %v56_v7 }
  0x16   :  { %229 = vmatpush3.msra.mxu0 %v56_v7  ;;  %p303_p9 = pnand %p302_p8, %p296_p5 }
  0x17   :  { %230 = vmatprep.subr.mxu0 %v55_v8 }
  0x18   :  { %265 = vset.pattern.permute.xlu0 %v323_v6  ;;  %231 = vmatpush3.msra.mxu0 %v55_v8 }
  0x19   :  { %161 = vperm.xlu0 %265, %v30_v1   ;;  %232 = vmatprep.subr.mxu0 %v54_v9 }
  0x1a   :  { %233 = vmatpush3.msra.mxu0 %v54_v9 }
  0x1b   :  { %234 = vmatprep.subr.mxu0 %v53_v10 }
  0x1c   :  { %235 = vmatpush3.msra.mxu0 %v53_v10 }
  0x1d   :  { %236 = vmatprep.subr.mxu0 %v52_v11 }
  0x1e   :  { %237 = vmatpush3.msra.mxu0 %v52_v11 }
  0x1f   :  { %238 = vmatprep.subr.mxu0 %v51_v12 }
  0x20   :  { %239 = vmatpush3.msra.mxu0 %v51_v12 }
  0x21   :  { %240 = vmatprep.subr.mxu0 %v50_v13 }
  0x22   :  { %241 = vmatpush3.msra.mxu0 %v50_v13 }
  0x23   :  { %242 = vmatprep.subr.mxu0 %v49_v14 }
  0x24   :  { %243 = vmatpush3.msra.mxu0 %v49_v14 }
  0x25   :  { %244 = vmatprep.subr.mxu0 %v48_v15 }
  0x26   :  { %245 = vmatpush3.msra.mxu0 %v48_v15 }
  0x27   :  { %246 = vmatprep.subr.mxu0 %v47_v16 }
  0x28   :  { %247 = vmatpush3.msra.mxu0 %v47_v16 }
  0x29   :  { %248 = vmatprep.subr.mxu0 %v46_v17 }
  0x2a   :  { %249 = vmatpush3.msra.mxu0 %v46_v17 }
  0x2b   :  { %250 = vmatprep.subr.mxu0 %v45_v18 }
  0x2c   :  { %251 = vmatpush3.msra.mxu0 %v45_v18 }
  0x2d   :  { %252 = vmatprep.subr.mxu0 %v44_v19 }
  0x2e   :  { %253 = vmatpush3.msra.mxu0 %v44_v19 }
  0x8b   :  { %v34_v22 = vpop.permute.xlu0 %33 }
  0x8c   :  { %vm38_vm0 = vcmp.eq.s32.totalorder %v34_v22, %v29_v21 }
  0x8d   :  { %254 = vmatprep.mubr.msk.f32.mxu0 %vm38_vm0, %v324_v23 }
  0x8f   :  { %v37_v24 = vpop.permute.xlu0 %36 }
  0x90   :  { %vm39_vm1 = vcmp.eq.s32.totalorder %v37_v24, %v29_v21 }
  0x91   :  { %255 = vmatmul.mubr.msk.f32.vlgmr.msra.gmra.mxu0 %vm39_vm1, %v324_v23 }
  0x94   :  { %v162_v35 = vpop.permute.xlu0 %161 }
  0x95   :  { %vm166_vm3 = vcmp.eq.s32.totalorder %v162_v35, %v29_v21 }
 0x151   :  { %v256_v25 = vpop.f32.mrf.mxu0 }
 0x152   :  { %136 = vst [vmem:[#allocation5 + $0x8] sm:$0xff] %v256_v25  ;;  %v139_v28 = vsel %vm137_vm2, %v256_v25, -1e+30 }
 0x153   :  { %v126_v26 = vpop.f32.mrf.mxu0 }
 0x154   :  { %135 = vst [vmem:[#allocation5] sm:$0xff] %v126_v26  ;;  %v138_v27 = vsel %vm137_vm2, %v126_v26, -1e+30  ;;  %v168_v39 = vsel %vm166_vm3, %v126_v26, 0.0 }
 0x155   :  { %140 = vmax.xlane.f32.xlu1 %v138_v27 }
 0x159   :  { %142 = vmax.xlane.f32.xlu1 %v139_v28 }
 0x16a   :  { %164 = vperm.xlu1 %266, %v358_v4  }
 0x1de   :  { %v141_v29 = vpop.xlane.xlu1 %140 }
 0x1df   :  { %v144_v30 = vsub.f32 %v138_v27, %v141_v29 }
 0x1e1   :  { %v146_v31 = vmul.f32 1.442695, %v144_v30 }
 0x1e2   :  { %v143_v32 = vpop.xlane.xlu1 %142 }
 0x1e3   :  { %267 = vpow2.f32 %v146_v31  ;;  %v145_v33 = vsub.f32 %v139_v28, %v143_v32 }
 0x1e5   :  { %v148_v34 = vmul.f32 1.442695, %v145_v33 }
 0x1e6   :  { %v165_v37 = vpop.permute.xlu1 %164 }
 0x1e7   :  { %269 = vpow2.f32 %v148_v34  ;;  %vm167_vm4 = vcmp.eq.s32.totalorder %v165_v37, %v29_v21 }
 0x1e8   :  { %v169_v40 = vsel %vm167_vm4, %v256_v25, 0.0 }
 0x1f0   :  { %v268_v36 = vpop.eup %267 }
 0x1f1   :  { %150 = vadd.xlane.f32.xlu0 %v268_v36 }
 0x1f4   :  { %v270_v38 = vpop.eup %269 }
 0x1f5   :  { %152 = vadd.xlane.f32.xlu1 %v270_v38  ;;  %170 = vadd.xlane.f32.xlu0 %v168_v39 }
 0x1f9   :  { %172 = vadd.xlane.f32.xlu0 %v169_v40 }
 0x1fa   :  { %306 = shalt.err (!%p303_p9)
}
 0x1fb   :  { %190 = dma.vmem_to_hbm [thread:$0]  %s185_s1, 256, %s376_s2, [#allocation4], %s320_s15, %s320_s15, %s321_s16   ;;  %vm176_vm5 = vcmask 7168  }
 0x27a   :  { %v151_v41 = vpop.xlane.xlu0 %150 }
 0x27b   :  { %271 = vlog2.f32 %v151_v41 }
 0x27e   :  { %v153_v42 = vpop.xlane.xlu1 %152  ;;  %v171_v45 = vpop.xlane.xlu0 %170 }
 0x27f   :  { %273 = vlog2.f32 %v153_v42 }
 0x282   :  { %v173_v51 = vpop.xlane.xlu0 %172 }
 0x288   :  { %v272_v43 = vpop.eup %271 }
 0x289   :  { %v155_v44 = vmul.f32 0.6931472, %v272_v43 }
 0x28b   :  { %v158_v46 = vadd.f32 %v155_v44, %v141_v29 }
 0x28c   :  { %v274_v47 = vpop.eup %273 }
 0x28d   :  { %v157_v48 = vmul.f32 0.6931472, %v274_v47  ;;  %v174_v49 = vsub.f32 %v158_v46, %v171_v45 }
 0x28f   :  { %177 = vst.msk [vmem:[%s377_s3] sm:$0xff] %vm176_vm5, %v174_v49  ;;  %v159_v50 = vadd.f32 %v157_v48, %v143_v32 }
 0x291   :  { %v175_v52 = vsub.f32 %v159_v50, %v173_v51 }
 0x293   :  { %178 = vst.msk [vmem:[%s377_s3 + $0x8] sm:$0xff] %vm176_vm5, %v175_v52 }
 0x294   :  { %317 = dma.done.wait [#allocation4], 256  }
 0x295   :  { %318 = vsyncadd [#allocation4], 4294967040 }
 0x296   :  { %198 = vsyncpa [#allocation3], 1 }
 0x297   :  { %199 = vsyncpa [#allocation4], 1 }

</bundles_post_ra>
